<compile_context>
chip_gen: v6e
topology: v6e:2x2x1
jax: 0.10.0
libtpu: 0.0.40
codegen_flags: <defaults>
</compile_context>

<pallas_src>
import jax
import jax.numpy as jnp
from jax import lax
from jax.experimental import pallas as pl
from jax.experimental.pallas import tpu as pltpu

_NORM_EPS = 1e-12          # torch.nn.functional.normalize default eps
_SQRT_HALF = 0.7071067811865476


def _round_up(v, m):
    return -(-v // m) * m


def _erf(x):
    # Abramowitz & Stegun 7.1.26 rational approximation of erf, |err| <= 1.5e-7.
    a1, a2, a3, a4, a5 = (0.254829592, -0.284496736, 1.421413741,
                          -1.453152027, 1.061405429)
    p = 0.3275911
    ax = jnp.abs(x)
    d = 1.0 + p * ax
    # EUP reciprocal (frees a VALU divide) + one Newton step -> ~f32-exact.
    t = pl.reciprocal(d, approx=True)
    t = t * (2.0 - d * t)
    poly = ((((a5 * t + a4) * t + a3) * t + a2) * t + a1) * t
    y = 1.0 - poly * jnp.exp(-ax * ax)
    return jnp.where(x < 0.0, -y, y)


def _gelu_exact(x):
    # PyTorch nn.GELU() default: 0.5 * x * (1 + erf(x / sqrt(2))).
    return 0.5 * x * (1.0 + _erf(x * _SQRT_HALF))


def _proj_head_kernel(x_ref, w1_ref, b1_ref, w2_ref, b2_ref, o_ref):
    # First matmul in the native input/weight dtype (bf16 MXU path if the
    # model is bf16); accumulate in f32.
    h = jnp.dot(x_ref[...], w1_ref[...], preferred_element_type=jnp.float32)
    h = h + b1_ref[...].astype(jnp.float32)
    h = _gelu_exact(h)

    # Second matmul: cast h to the weight dtype (no-op for f32 weights, keeps
    # the bf16 MXU path otherwise); accumulate in f32.
    z = jnp.dot(h.astype(w2_ref.dtype), w2_ref[...],
                preferred_element_type=jnp.float32)
    z = z + b2_ref[...].astype(jnp.float32)

    # F.normalize(p=2, dim=-1).  keepdims keeps the reduction 2-D ((tb, 1)).
    # Exact divide here: the tensor is tiny and the 1e-4 unit-norm check must
    # hold (approx reciprocal error ~2^-12 would be marginal).
    sq = jnp.sum(z * z, axis=-1, keepdims=True)
    inv = 1.0 / jnp.maximum(jnp.sqrt(sq), _NORM_EPS)
    o_ref[...] = (z * inv).astype(o_ref.dtype)


def nonlinear_projection_head(x, w1, b1, w2, b2, *, block_b=None):
    """x: (B, D_in); w1: (D_in, H); b1: (H,); w2: (H, D_out); b2: (D_out,)."""
    B, D_in = x.shape
    H = w1.shape[1]
    D_out = w2.shape[1]
    assert w1.shape == (D_in, H)
    assert b1.shape == (H,)
    assert w2.shape == (H, D_out)
    assert b2.shape == (D_out,)

    out_dtype = x.dtype

    # ---- lane-dense feature dims (pad small weight matrices once) ----------
    H_p = _round_up(H, 128)
    D_out_p = _round_up(D_out, 128)
    w1p = jnp.pad(w1, ((0, 0), (0, H_p - H))) if H_p != H else w1
    b1p = jnp.pad(b1, (0, H_p - H)) if H_p != H else b1
    if H_p != H or D_out_p != D_out:
        w2p = jnp.pad(w2, ((0, H_p - H), (0, D_out_p - D_out)))
    else:
        w2p = w2
    b2p = jnp.pad(b2, (0, D_out_p - D_out)) if D_out_p != D_out else b2
    b1_2d = b1p.reshape(1, H_p)
    b2_2d = b2p.reshape(1, D_out_p)

    # ---- VMEM-budgeted batch tiling -----------------------------------------
    try:
        vmem_cap = int(pltpu.get_tpu_info().vmem_capacity_bytes)
    except Exception:
        vmem_cap = 64 << 20                       # conservative (v7x per-TC)
    budget = min((vmem_cap * 3) // 4, 112 << 20)  # ~48 MiB v7x, ~96 MiB v5e/v6e

    x_bytes = x.dtype.itemsize
    w_bytes = w1.dtype.itemsize
    o_bytes = jnp.dtype(out_dtype).itemsize
    # Weights resident once (Buffered(1)); x/out tiles double-buffered; f32
    # h/z/GELU temporaries counted per row.
    weight_bytes = w_bytes * (D_in * H_p + H_p + H_p * D_out_p + D_out_p)
    per_row_bytes = (2 * D_in * x_bytes + 2 * D_out_p * o_bytes
                     + 4 * (3 * H_p + 3 * D_out_p))

    b8 = _round_up(max(B, 1), 8)
    if block_b is None:
        block_b = (budget - weight_bytes) // max(per_row_bytes, 1)
        block_b = max(8, min(4096, (block_b // 8) * 8))
    block_b = max(8, min((block_b // 8) * 8, b8))

    num_tiles = pl.cdiv(B, block_b)
    # Keep >= 2 parallel grid steps when the batch allows it (v7x: 2 TCs/chip).
    if num_tiles == 1 and b8 >= 16:
        block_b = _round_up(-(-b8 // 2), 8)
        num_tiles = pl.cdiv(B, block_b)

    vmem_limit = int(min(budget + (8 << 20), (vmem_cap * 7) // 8))

    cost = pl.CostEstimate(
        flops=2 * B * (D_in * H_p + H_p * D_out_p) + 20 * B * H_p + 8 * B * D_out_p,
        transcendentals=2 * B * H_p,              # exp + reciprocal per GELU elem
        bytes_accessed=x_bytes * B * D_in + o_bytes * B * D_out_p + weight_bytes,
    )

    def _call(single_buffer_weights):
        if single_buffer_weights:
            def wspec(shape):
                return pl.BlockSpec(shape, lambda i: (0, 0),
                                    pipeline_mode=pl.Buffered(1))
        else:
            def wspec(shape):
                return pl.BlockSpec(shape, lambda i: (0, 0))

        grid_spec = pltpu.PrefetchScalarGridSpec(
            num_scalar_prefetch=0,
            grid=(num_tiles,),
            in_specs=[
                pl.BlockSpec((block_b, D_in), lambda i: (i, 0)),
                wspec((D_in, H_p)),
                wspec((1, H_p)),
                wspec((H_p, D_out_p)),
                wspec((1, D_out_p)),
            ],
            out_specs=pl.BlockSpec((block_b, D_out_p), lambda i: (i, 0)),
        )
        return pl.pallas_call(
            _proj_head_kernel,
            out_shape=jax.ShapeDtypeStruct((B, D_out_p), out_dtype),
            grid_spec=grid_spec,
            compiler_params=pltpu.CompilerParams(
                dimension_semantics=("parallel",),   # batch tiles independent
                vmem_limit_bytes=vmem_limit,
            ),
            cost_estimate=cost,
        )(x, w1p, b1_2d, w2p, b2_2d)

    try:
        out = _call(True)
    except Exception:
        # pipeline_mode / Buffered(1) unsupported in this jax version: fall back
        # to default double-buffered weights (correctness unchanged).
        out = _call(False)

    return out if D_out_p == D_out else out[:, :D_out]


def _reference(x, w1, b1, w2, b2):
    xf = x.astype(jnp.float32)
    h = jnp.dot(xf, w1.astype(jnp.float32),
                precision=lax.Precision.HIGHEST) + b1.astype(jnp.float32)
    h = jax.nn.gelu(h, approximate=False)        # exact erf GELU (PyTorch default)
    z = jnp.dot(h, w2.astype(jnp.float32),
                precision=lax.Precision.HIGHEST) + b2.astype(jnp.float32)
    norm = jnp.maximum(jnp.sqrt(jnp.sum(z * z, axis=-1, keepdims=True)), _NORM_EPS)
    return (z / norm).astype(x.dtype)


if __name__ == "__main__":
    key = jax.random.PRNGKey(0)
    kx, kw1, kb1, kw2, kb2 = jax.random.split(key, 5)

    B, D_IN, HIDDEN, D_OUT = 8, 32, 64, 16
    x = jax.random.normal(kx, (B, D_IN), dtype=jnp.float32)

    # nn.Linear-style init: U(-1/sqrt(fan_in), 1/sqrt(fan_in))
    lim1 = 1.0 / (D_IN ** 0.5)
    lim2 = 1.0 / (HIDDEN ** 0.5)
    w1 = jax.random.uniform(kw1, (D_IN, HIDDEN), jnp.float32, -lim1, lim1)
    b1 = jax.random.uniform(kb1, (HIDDEN,), jnp.float32, -lim1, lim1)
    w2 = jax.random.uniform(kw2, (HIDDEN, D_OUT), jnp.float32, -lim2, lim2)
    b2 = jax.random.uniform(kb2, (D_OUT,), jnp.float32, -lim2, lim2)

    out = nonlinear_projection_head(x, w1, b1, w2, b2)
    out = jax.block_until_ready(out)

    ref = _reference(x, w1, b1, w2, b2)
    assert out.shape == (B, D_OUT), out.shape

    # Tolerance covers the erf rational approximation (<2e-7) plus MXU f32
    # multi-pass vs XLA HIGHEST matmul rounding differences.
    max_err = float(jnp.max(jnp.abs(out - ref)))
    assert jnp.allclose(out, ref, rtol=2e-3, atol=2e-3), max_err
    # Rows must be unit-norm after F.normalize.
    row_norms = jnp.sqrt(jnp.sum(out.astype(jnp.float32) ** 2, axis=-1))
    assert jnp.allclose(row_norms, 1.0, atol=1e-4), row_norms

    print("KERNEL_OK")
</pallas_src>

<mosaic_0001>
module attributes {stable_mosaic.version = 11 : i64} {
  func.func @_proj_head_kernel(%arg0: i32, %arg1: memref<8x32xf32, #tpu.memory_space<vmem>>, %arg2: memref<32x128xf32, #tpu.memory_space<vmem>>, %arg3: memref<1x128xf32, #tpu.memory_space<vmem>>, %arg4: memref<128x128xf32, #tpu.memory_space<vmem>>, %arg5: memref<1x128xf32, #tpu.memory_space<vmem>>, %arg6: memref<8x128xf32, #tpu.memory_space<vmem>>) attributes {dimension_semantics = [#tpu.dimension_semantics<parallel>], iteration_bounds = array<i64: 1>, scalar_prefetch = 0 : i64, scratch_operands = 0 : i64, tpu.core_type = #tpu.core_type<tc>, window_params = [{transform_indices = @transform_0, window_bounds = array<i64: 8, 32>}, {pipeline_mode = #tpu.pipeline_mode<synchronous>, transform_indices = @transform_1, window_bounds = array<i64: 32, 128>}, {pipeline_mode = #tpu.pipeline_mode<synchronous>, transform_indices = @transform_2, window_bounds = array<i64: 1, 128>}, {pipeline_mode = #tpu.pipeline_mode<synchronous>, transform_indices = @transform_3, window_bounds = array<i64: 128, 128>}, {pipeline_mode = #tpu.pipeline_mode<synchronous>, transform_indices = @transform_4, window_bounds = array<i64: 1, 128>}, {transform_indices = @transform_5, window_bounds = array<i64: 8, 128>}]} {
    %c0 = arith.constant 0 : index
    %c0_0 = arith.constant 0 : index
    %0 = vector.load %arg1[%c0, %c0_0] : memref<8x32xf32, #tpu.memory_space<vmem>>, vector<8x32xf32>
    %c0_1 = arith.constant 0 : index
    %c0_2 = arith.constant 0 : index
    %1 = vector.load %arg2[%c0_1, %c0_2] : memref<32x128xf32, #tpu.memory_space<vmem>>, vector<32x128xf32>
    %cst = arith.constant dense<0.000000e+00> : vector<8x128xf32>
    %2 = tpu.matmul %0, %1, %cst {dimension_numbers = #tpu.dot_dimension_numbers<[1], [0], [0], [1], [0, 0, 1, 1], [], []>} : vector<8x32xf32>, vector<32x128xf32>, vector<8x128xf32> -> vector<8x128xf32>
    %c0_3 = arith.constant 0 : index
    %c0_4 = arith.constant 0 : index
    %3 = vector.load %arg3[%c0_3, %c0_4] : memref<1x128xf32, #tpu.memory_space<vmem>>, vector<1x128xf32>
    %4 = vector.broadcast %3 : vector<1x128xf32> to vector<8x128xf32>
    %5 = arith.addf %2, %4 : vector<8x128xf32>
    %cst_5 = arith.constant 5.000000e-01 : f32
    %6 = vector.broadcast %cst_5 : f32 to vector<8x128xf32>
    %7 = arith.mulf %6, %5 : vector<8x128xf32>
    %cst_6 = arith.constant 0.707106769 : f32
    %8 = vector.broadcast %cst_6 : f32 to vector<8x128xf32>
    %9 = arith.mulf %5, %8 : vector<8x128xf32>
    %10 = math.absf %9 : vector<8x128xf32>
    %cst_7 = arith.constant 0.327591091 : f32
    %11 = vector.broadcast %cst_7 : f32 to vector<8x128xf32>
    %12 = arith.mulf %11, %10 : vector<8x128xf32>
    %cst_8 = arith.constant 1.000000e+00 : f32
    %13 = vector.broadcast %cst_8 : f32 to vector<8x128xf32>
    %14 = arith.addf %13, %12 : vector<8x128xf32>
    %15 = tpu.reciprocal %14 {approx = true} : vector<8x128xf32> -> vector<8x128xf32>
    %16 = arith.mulf %14, %15 : vector<8x128xf32>
    %cst_9 = arith.constant 2.000000e+00 : f32
    %17 = vector.broadcast %cst_9 : f32 to vector<8x128xf32>
    %18 = arith.subf %17, %16 : vector<8x128xf32>
    %19 = arith.mulf %15, %18 : vector<8x128xf32>
    %cst_10 = arith.constant 1.06140542 : f32
    %20 = vector.broadcast %cst_10 : f32 to vector<8x128xf32>
    %21 = arith.mulf %20, %19 : vector<8x128xf32>
    %cst_11 = arith.constant -1.45315206 : f32
    %22 = vector.broadcast %cst_11 : f32 to vector<8x128xf32>
    %23 = arith.addf %21, %22 : vector<8x128xf32>
    %24 = arith.mulf %23, %19 : vector<8x128xf32>
    %cst_12 = arith.constant 1.42141378 : f32
    %25 = vector.broadcast %cst_12 : f32 to vector<8x128xf32>
    %26 = arith.addf %24, %25 : vector<8x128xf32>
    %27 = arith.mulf %26, %19 : vector<8x128xf32>
    %cst_13 = arith.constant -0.284496725 : f32
    %28 = vector.broadcast %cst_13 : f32 to vector<8x128xf32>
    %29 = arith.addf %27, %28 : vector<8x128xf32>
    %30 = arith.mulf %29, %19 : vector<8x128xf32>
    %cst_14 = arith.constant 0.254829586 : f32
    %31 = vector.broadcast %cst_14 : f32 to vector<8x128xf32>
    %32 = arith.addf %30, %31 : vector<8x128xf32>
    %33 = arith.mulf %32, %19 : vector<8x128xf32>
    %cst_15 = arith.constant 0.000000e+00 : f32
    %34 = vector.broadcast %cst_15 : f32 to vector<8x128xf32>
    %35 = arith.subf %34, %10 : vector<8x128xf32>
    %36 = arith.mulf %35, %10 : vector<8x128xf32>
    %37 = math.exp %36 : vector<8x128xf32>
    %38 = arith.mulf %33, %37 : vector<8x128xf32>
    %cst_16 = arith.constant 1.000000e+00 : f32
    %39 = vector.broadcast %cst_16 : f32 to vector<8x128xf32>
    %40 = arith.subf %39, %38 : vector<8x128xf32>
    %cst_17 = arith.constant 0.000000e+00 : f32
    %41 = vector.broadcast %cst_17 : f32 to vector<8x128xf32>
    %42 = arith.cmpf olt, %9, %41 : vector<8x128xf32>
    %cst_18 = arith.constant 0.000000e+00 : f32
    %43 = vector.broadcast %cst_18 : f32 to vector<8x128xf32>
    %44 = arith.subf %43, %40 : vector<8x128xf32>
    %45 = arith.select %42, %44, %40 : vector<8x128xi1>, vector<8x128xf32>
    %cst_19 = arith.constant 1.000000e+00 : f32
    %46 = vector.broadcast %cst_19 : f32 to vector<8x128xf32>
    %47 = arith.addf %46, %45 : vector<8x128xf32>
    %48 = arith.mulf %7, %47 : vector<8x128xf32>
    %c0_20 = arith.constant 0 : index
    %c0_21 = arith.constant 0 : index
    %49 = vector.load %arg4[%c0_20, %c0_21] : memref<128x128xf32, #tpu.memory_space<vmem>>, vector<128x128xf32>
    %cst_22 = arith.constant dense<0.000000e+00> : vector<8x128xf32>
    %50 = tpu.matmul %48, %49, %cst_22 {dimension_numbers = #tpu.dot_dimension_numbers<[1], [0], [0], [1], [0, 0, 1, 1], [], []>} : vector<8x128xf32>, vector<128x128xf32>, vector<8x128xf32> -> vector<8x128xf32>
    %c0_23 = arith.constant 0 : index
    %c0_24 = arith.constant 0 : index
    %51 = vector.load %arg5[%c0_23, %c0_24] : memref<1x128xf32, #tpu.memory_space<vmem>>, vector<1x128xf32>
    %52 = vector.broadcast %51 : vector<1x128xf32> to vector<8x128xf32>
    %53 = arith.addf %50, %52 : vector<8x128xf32>
    %54 = arith.mulf %53, %53 : vector<8x128xf32>
    %cst_25 = arith.constant dense<0.000000e+00> : vector<8xf32>
    %55 = vector.multi_reduction <add>, %54, %cst_25 [1] : vector<8x128xf32> to vector<8xf32>
    %56 = vector.shape_cast %55 : vector<8xf32> to vector<8x1xf32>
    %57 = math.sqrt %56 : vector<8x1xf32>
    %cst_26 = arith.constant 9.99999996E-13 : f32
    %58 = vector.broadcast %cst_26 : f32 to vector<8x1xf32>
    %59 = arith.maximumf %57, %58 : vector<8x1xf32>
    %cst_27 = arith.constant 1.000000e+00 : f32
    %60 = vector.broadcast %cst_27 : f32 to vector<8x1xf32>
    %61 = arith.divf %60, %59 : vector<8x1xf32>
    %62 = vector.broadcast %61 : vector<8x1xf32> to vector<8x128xf32>
    %63 = arith.mulf %53, %62 : vector<8x128xf32>
    %c0_28 = arith.constant 0 : index
    %c0_29 = arith.constant 0 : index
    %64 = vector.load %arg6[%c0_28, %c0_29] : memref<8x128xf32, #tpu.memory_space<vmem>>, vector<8x128xf32>
    tpu.vector_store %arg6[%c0_28, %c0_29], %63 {strides = array<i32>} : memref<8x128xf32, #tpu.memory_space<vmem>>, vector<8x128xf32>,
    return
  }
  func.func @transform_0(%arg0: i32) -> (i32, i32) {
    %c0_i32 = arith.constant 0 : i32
    %c0_i32_0 = arith.constant 0 : i32
    return %arg0, %c0_i32 : i32, i32
  }
  func.func @transform_1(%arg0: i32) -> (i32, i32) {
    %c0_i32 = arith.constant 0 : i32
    %c0_i32_0 = arith.constant 0 : i32
    %c0_i32_1 = arith.constant 0 : i32
    return %c0_i32, %c0_i32_0 : i32, i32
  }
  func.func @transform_2(%arg0: i32) -> (i32, i32) {
    %c0_i32 = arith.constant 0 : i32
    %c0_i32_0 = arith.constant 0 : i32
    %c0_i32_1 = arith.constant 0 : i32
    return %c0_i32, %c0_i32_0 : i32, i32
  }
  func.func @transform_3(%arg0: i32) -> (i32, i32) {
    %c0_i32 = arith.constant 0 : i32
    %c0_i32_0 = arith.constant 0 : i32
    %c0_i32_1 = arith.constant 0 : i32
    return %c0_i32, %c0_i32_0 : i32, i32
  }
  func.func @transform_4(%arg0: i32) -> (i32, i32) {
    %c0_i32 = arith.constant 0 : i32
    %c0_i32_0 = arith.constant 0 : i32
    %c0_i32_1 = arith.constant 0 : i32
    return %c0_i32, %c0_i32_0 : i32, i32
  }
  func.func @transform_5(%arg0: i32) -> (i32, i32) {
    %c0_i32 = arith.constant 0 : i32
    %c0_i32_0 = arith.constant 0 : i32
    return %arg0, %c0_i32 : i32, i32
  }
}

module attributes {stable_mosaic.version = 11 : i64} {
  func.func @_proj_head_kernel(%arg0: i32, %arg1: memref<8x32xf32, #tpu.memory_space<vmem>>, %arg2: memref<32x128xf32, #tpu.memory_space<vmem>>, %arg3: memref<1x128xf32, #tpu.memory_space<vmem>>, %arg4: memref<128x128xf32, #tpu.memory_space<vmem>>, %arg5: memref<1x128xf32, #tpu.memory_space<vmem>>, %arg6: memref<8x128xf32, #tpu.memory_space<vmem>>) attributes {dimension_semantics = [#tpu.dimension_semantics<parallel>], iteration_bounds = array<i64: 1>, scalar_prefetch = 0 : i64, scratch_operands = 0 : i64, tpu.core_type = #tpu.core_type<tc>, window_params = [{transform_indices = @transform_0, window_bounds = array<i64: 8, 32>}, {pipeline_mode = #tpu.pipeline_mode<synchronous>, transform_indices = @transform_1, window_bounds = array<i64: 32, 128>}, {pipeline_mode = #tpu.pipeline_mode<synchronous>, transform_indices = @transform_2, window_bounds = array<i64: 1, 128>}, {pipeline_mode = #tpu.pipeline_mode<synchronous>, transform_indices = @transform_3, window_bounds = array<i64: 128, 128>}, {pipeline_mode = #tpu.pipeline_mode<synchronous>, transform_indices = @transform_4, window_bounds = array<i64: 1, 128>}, {transform_indices = @transform_5, window_bounds = array<i64: 8, 128>}]} {
    %c0 = arith.constant 0 : index
    %c0_0 = arith.constant 0 : index
    %0 = vector.load %arg1[%c0, %c0_0] : memref<8x32xf32, #tpu.memory_space<vmem>>, vector<8x32xf32>
    %c0_1 = arith.constant 0 : index
    %c0_2 = arith.constant 0 : index
    %1 = vector.load %arg2[%c0_1, %c0_2] : memref<32x128xf32, #tpu.memory_space<vmem>>, vector<32x128xf32>
    %cst = arith.constant dense<0.000000e+00> : vector<8x128xf32>
    %2 = tpu.matmul %0, %1, %cst {dimension_numbers = #tpu.dot_dimension_numbers<[1], [0], [0], [1], [0, 0, 1, 1], [], []>} : vector<8x32xf32>, vector<32x128xf32>, vector<8x128xf32> -> vector<8x128xf32>
    %c0_3 = arith.constant 0 : index
    %c0_4 = arith.constant 0 : index
    %3 = vector.load %arg3[%c0_3, %c0_4] : memref<1x128xf32, #tpu.memory_space<vmem>>, vector<1x128xf32>
    %4 = vector.broadcast %3 : vector<1x128xf32> to vector<8x128xf32>
    %5 = arith.addf %2, %4 : vector<8x128xf32>
    %cst_5 = arith.constant 5.000000e-01 : f32
    %6 = vector.broadcast %cst_5 : f32 to vector<8x128xf32>
    %7 = arith.mulf %6, %5 : vector<8x128xf32>
    %cst_6 = arith.constant 0.707106769 : f32
    %8 = vector.broadcast %cst_6 : f32 to vector<8x128xf32>
    %9 = arith.mulf %5, %8 : vector<8x128xf32>
    %10 = math.absf %9 : vector<8x128xf32>
    %cst_7 = arith.constant 0.327591091 : f32
    %11 = vector.broadcast %cst_7 : f32 to vector<8x128xf32>
    %12 = arith.mulf %11, %10 : vector<8x128xf32>
    %cst_8 = arith.constant 1.000000e+00 : f32
    %13 = vector.broadcast %cst_8 : f32 to vector<8x128xf32>
    %14 = arith.addf %13, %12 : vector<8x128xf32>
    %15 = tpu.reciprocal %14 {approx = true} : vector<8x128xf32> -> vector<8x128xf32>
    %16 = arith.mulf %14, %15 : vector<8x128xf32>
    %cst_9 = arith.constant 2.000000e+00 : f32
    %17 = vector.broadcast %cst_9 : f32 to vector<8x128xf32>
    %18 = arith.subf %17, %16 : vector<8x128xf32>
    %19 = arith.mulf %15, %18 : vector<8x128xf32>
    %cst_10 = arith.constant 1.06140542 : f32
    %20 = vector.broadcast %cst_10 : f32 to vector<8x128xf32>
    %21 = arith.mulf %20, %19 : vector<8x128xf32>
    %cst_11 = arith.constant -1.45315206 : f32
    %22 = vector.broadcast %cst_11 : f32 to vector<8x128xf32>
    %23 = arith.addf %21, %22 : vector<8x128xf32>
    %24 = arith.mulf %23, %19 : vector<8x128xf32>
    %cst_12 = arith.constant 1.42141378 : f32
    %25 = vector.broadcast %cst_12 : f32 to vector<8x128xf32>
    %26 = arith.addf %24, %25 : vector<8x128xf32>
    %27 = arith.mulf %26, %19 : vector<8x128xf32>
    %cst_13 = arith.constant -0.284496725 : f32
    %28 = vector.broadcast %cst_13 : f32 to vector<8x128xf32>
    %29 = arith.addf %27, %28 : vector<8x128xf32>
    %30 = arith.mulf %29, %19 : vector<8x128xf32>
    %cst_14 = arith.constant 0.254829586 : f32
    %31 = vector.broadcast %cst_14 : f32 to vector<8x128xf32>
    %32 = arith.addf %30, %31 : vector<8x128xf32>
    %33 = arith.mulf %32, %19 : vector<8x128xf32>
    %cst_15 = arith.constant 0.000000e+00 : f32
    %34 = vector.broadcast %cst_15 : f32 to vector<8x128xf32>
    %35 = arith.subf %34, %10 : vector<8x128xf32>
    %36 = arith.mulf %35, %10 : vector<8x128xf32>
    %37 = math.exp %36 : vector<8x128xf32>
    %38 = arith.mulf %33, %37 : vector<8x128xf32>
    %cst_16 = arith.constant 1.000000e+00 : f32
    %39 = vector.broadcast %cst_16 : f32 to vector<8x128xf32>
    %40 = arith.subf %39, %38 : vector<8x128xf32>
    %cst_17 = arith.constant 0.000000e+00 : f32
    %41 = vector.broadcast %cst_17 : f32 to vector<8x128xf32>
    %42 = arith.cmpf olt, %9, %41 : vector<8x128xf32>
    %cst_18 = arith.constant 0.000000e+00 : f32
    %43 = vector.broadcast %cst_18 : f32 to vector<8x128xf32>
    %44 = arith.subf %43, %40 : vector<8x128xf32>
    %45 = arith.select %42, %44, %40 : vector<8x128xi1>, vector<8x128xf32>
    %cst_19 = arith.constant 1.000000e+00 : f32
    %46 = vector.broadcast %cst_19 : f32 to vector<8x128xf32>
    %47 = arith.addf %46, %45 : vector<8x128xf32>
    %48 = arith.mulf %7, %47 : vector<8x128xf32>
    %c0_20 = arith.constant 0 : index
    %c0_21 = arith.constant 0 : index
    %49 = vector.load %arg4[%c0_20, %c0_21] : memref<128x128xf32, #tpu.memory_space<vmem>>, vector<128x128xf32>
    %cst_22 = arith.constant dense<0.000000e+00> : vector<8x128xf32>
    %50 = tpu.matmul %48, %49, %cst_22 {dimension_numbers = #tpu.dot_dimension_numbers<[1], [0], [0], [1], [0, 0, 1, 1], [], []>} : vector<8x128xf32>, vector<128x128xf32>, vector<8x128xf32> -> vector<8x128xf32>
    %c0_23 = arith.constant 0 : index
    %c0_24 = arith.constant 0 : index
    %51 = vector.load %arg5[%c0_23, %c0_24] : memref<1x128xf32, #tpu.memory_space<vmem>>, vector<1x128xf32>
    %52 = vector.broadcast %51 : vector<1x128xf32> to vector<8x128xf32>
    %53 = arith.addf %50, %52 : vector<8x128xf32>
    %54 = arith.mulf %53, %53 : vector<8x128xf32>
    %cst_25 = arith.constant dense<0.000000e+00> : vector<8xf32>
    %55 = vector.multi_reduction <add>, %54, %cst_25 [1] : vector<8x128xf32> to vector<8xf32>
    %56 = vector.shape_cast %55 : vector<8xf32> to vector<8x1xf32>
    %57 = math.sqrt %56 : vector<8x1xf32>
    %cst_26 = arith.constant 9.99999996E-13 : f32
    %58 = vector.broadcast %cst_26 : f32 to vector<8x1xf32>
    %59 = arith.maximumf %57, %58 : vector<8x1xf32>
    %cst_27 = arith.constant 1.000000e+00 : f32
    %60 = vector.broadcast %cst_27 : f32 to vector<8x1xf32>
    %61 = arith.divf %60, %59 : vector<8x1xf32>
    %62 = vector.broadcast %61 : vector<8x1xf32> to vector<8x128xf32>
    %63 = arith.mulf %53, %62 : vector<8x128xf32>
    %c0_28 = arith.constant 0 : index
    %c0_29 = arith.constant 0 : index
    %64 = vector.load %arg6[%c0_28, %c0_29] : memref<8x128xf32, #tpu.memory_space<vmem>>, vector<8x128xf32>
    tpu.vector_store %arg6[%c0_28, %c0_29], %63 {strides = array<i32>} : memref<8x128xf32, #tpu.memory_space<vmem>>, vector<8x128xf32>,
    return
  }
  func.func @transform_0(%arg0: i32) -> (i32, i32) {
    %c0_i32 = arith.constant 0 : i32
    %c0_i32_0 = arith.constant 0 : i32
    return %arg0, %c0_i32 : i32, i32
  }
  func.func @transform_1(%arg0: i32) -> (i32, i32) {
    %c0_i32 = arith.constant 0 : i32
    %c0_i32_0 = arith.constant 0 : i32
    %c0_i32_1 = arith.constant 0 : i32
    return %c0_i32, %c0_i32_0 : i32, i32
  }
  func.func @transform_2(%arg0: i32) -> (i32, i32) {
    %c0_i32 = arith.constant 0 : i32
    %c0_i32_0 = arith.constant 0 : i32
    %c0_i32_1 = arith.constant 0 : i32
    return %c0_i32, %c0_i32_0 : i32, i32
  }
  func.func @transform_3(%arg0: i32) -> (i32, i32) {
    %c0_i32 = arith.constant 0 : i32
    %c0_i32_0 = arith.constant 0 : i32
    %c0_i32_1 = arith.constant 0 : i32
    return %c0_i32, %c0_i32_0 : i32, i32
  }
  func.func @transform_4(%arg0: i32) -> (i32, i32) {
    %c0_i32 = arith.constant 0 : i32
    %c0_i32_0 = arith.constant 0 : i32
    %c0_i32_1 = arith.constant 0 : i32
    return %c0_i32, %c0_i32_0 : i32, i32
  }
  func.func @transform_5(%arg0: i32) -> (i32, i32) {
    %c0_i32 = arith.constant 0 : i32
    %c0_i32_0 = arith.constant 0 : i32
    return %arg0, %c0_i32 : i32, i32
  }
}

</mosaic_0001>

<bundles_post_ra>
// kernel: tpu_custom_call.1
= control target key start
LH: loop header
LB: loop body
LE: loop exit
PB: predicated region body
PF: predicated region fallthrough
CT: control target
= control target key end

     0   :  { %10 = vsyncpa [#allocation3], 0  ;;  %s550_s0 = inlined_call_operand.hbm [shape: f32[8,32], index: 0, kind: input, shape index: {}]   ;;  %s551_s1 = inlined_call_operand.hbm [shape: f32[32,128], index: 1, kind: input, shape index: {}]   ;;  %s552_s2 = inlined_call_operand.vmem [shape: f32[1,128], index: 2, kind: input, shape index: {}]   ;;  %s553_s3 = inlined_call_operand.hbm [shape: f32[128,128], index: 3, kind: input, shape index: {}]   ;;  %s554_s4 = inlined_call_operand.vmem [shape: f32[1,128], index: 4, kind: input, shape index: {}]   ;;  %s555_s5 = inlined_call_operand.hbm [shape: f32[8,128], index: 5, kind: output, shape index: {}]  }
   0x1   :  { %11 = vsyncpa [#allocation6], 0 }
   0x2   :  { %12 = vsyncpa [#allocation4], 0  ;;  %s472_s18 = smov [#allocation5]  }
   0x3   :  { %s28_s19 = sshll.u32 %s472_s18, 4  ;;  %s29_s19 = int_to_ptr.vmem [resolvable:$true] %s28_s19 }
   0x4   :  { %s394_s20 = scalar_lea.vmem %s29_s19, 512  ;;  %p399_p1 = scmp.lt.s32.totalorder %s29_s19, %s29_s19 }
   0x5   :  { %p395_p0 = scmp.ne.s32.totalorder %s29_s19, %s394_s20  ;;  %p400_p2 = scmp.lt.s32.totalorder %s394_s20, %s394_s20 }
   0x7   :  { %p401_p3 = por %p400_p2, %p399_p1 }
   0x9   :  { %p402_p4 = pnand %p401_p3, %p395_p0 }
   0xb   :  { %405 = shalt.err (!%p402_p4)
}
   0xc   :  { %s473_s21 = smov 128   ;;  %s474_s22 = smov 8  }
   0xd   :  { %34 = dma.hbm_to_vmem [thread:$0]  %s551_s1, 512, %s29_s19, [#allocation6], %s473_s21, %s473_s21, %s474_s22  }
   0xe   :  { %s475_s25 = smov [#allocation2]   ;;  %s476_s27 = smov [#allocation7]  }
   0xf   :  { %s19_s26 = sshll.u32 %s475_s25, 4  ;;  %s42_s28 = sshll.u32 %s476_s27, 4  ;;  %s20_s26 = int_to_ptr.vmem [resolvable:$true] %s19_s26  ;;  %s43_s28 = int_to_ptr.vmem [resolvable:$true] %s42_s28 }
  0x10   :  { %s414_s29 = scalar_lea.vmem %s20_s26, 128  ;;  %p419_p6 = scmp.lt.s32.totalorder %s20_s26, %s20_s26 }
  0x11   :  { %p415_p5 = scmp.ne.s32.totalorder %s20_s26, %s414_s29  ;;  %p420_p7 = scmp.lt.s32.totalorder %s414_s29, %s414_s29 }
  0x13   :  { %p421_p8 = por %p420_p7, %p419_p6 }
  0x15   :  { %p422_p9 = pnand %p421_p8, %p415_p5 }
  0x17   :  { %425 = shalt.err (!%p422_p9)
}
  0x18   :  { %22 = dma.hbm_to_vmem [thread:$0]  %s550_s0, 128, %s20_s26, [#allocation3]  }
  0x19   :  { %s434_s7 = scalar_lea.vmem %s43_s28, 2048  ;;  %p439_p11 = scmp.lt.s32.totalorder %s43_s28, %s43_s28 }
  0x1a   :  { %p435_p10 = scmp.ne.s32.totalorder %s43_s28, %s434_s7  ;;  %p440_p12 = scmp.lt.s32.totalorder %s434_s7, %s434_s7 }
  0x1c   :  { %p441_p13 = por %p440_p12, %p439_p11 }
  0x1e   :  { %p442_p0 = pnand %p441_p13, %p435_p10 }
  0x20   :  { %445 = shalt.err (!%p442_p0)
}
  0x21   :  { %48 = dma.hbm_to_vmem [thread:$0]  %s553_s3, 2048, %s43_s28, [#allocation6], %s473_s21, %s473_s21, %s474_s22  }
  0x22   :  { %466 = dma.done.wait [#allocation3], 128  }
  0x23   :  { %467 = vsyncadd [#allocation3], 4294967168 }
  0x24   :  { %468 = dma.done.wait [#allocation6], 2560  }
  0x25   :  { %469 = vsyncadd [#allocation6], 4294964736  ;;  %v477_v0 = vmov 0.0   ;;  %vm478_vm0 = vmmov 0   ;;  %v64_v1 = vld [vmem:[#allocation5 + $0x18] sm:$0xff]  ;;  %v63_v2 = vld [vmem:[#allocation5 + $0x10] sm:$0xff] }
  0x26   :  { %324 = vmatprep.subr.mxu0 %v477_v0  ;;  %332 = vmatprep.mubr.msk.f32.mxu0 %vm478_vm0, %v477_v0  ;;  %v62_v3 = vld [vmem:[#allocation5 + $0x8] sm:$0xff]  ;;  %v61_v4 = vld [vmem:[#allocation5] sm:$0xff]  ;;  %v60_v5 = vld [vmem:[#allocation2] sm:$0xff]  ;;  %vm72_vm1 = vcmask 261120   ;;  %s479_s10 = smov [#allocation8]  }
  0x27   :  { %335 = vmatprep.subr.mxu1 %v477_v0  ;;  %367 = vmatprep.mubr.msk.f32.mxu1 %vm478_vm0, %v477_v0  ;;  %v190_v6 = vld [vmem:[#allocation7 + $0x78] sm:$0xff]  ;;  %v189_v7 = vld [vmem:[#allocation7 + $0x70] sm:$0xff]  ;;  %v188_v8 = vld [vmem:[#allocation7 + $0x68] sm:$0xff]  ;;  %s289_s11 = sshll.u32 %s479_s10, 4  ;;  %s290_s11 = int_to_ptr.vmem [resolvable:$true] %s289_s11 }
  0x28   :  { %325 = vmatpush3.msra.mxu0 %v64_v1  ;;  %336 = vmatpush3.msra.mxu1 %v190_v6  ;;  %v187_v9 = vld [vmem:[#allocation7 + $0x60] sm:$0xff]  ;;  %v186_v10 = vld [vmem:[#allocation7 + $0x58] sm:$0xff]  ;;  %v185_v11 = vld [vmem:[#allocation7 + $0x50] sm:$0xff]  ;;  %p451_p2 = scmp.lt.s32.totalorder %s290_s11, %s290_s11 }
  0x29   :  { %326 = vmatprep.subr.mxu0 %v477_v0  ;;  %337 = vmatprep.subr.mxu1 %v477_v0  ;;  %v184_v12 = vld [vmem:[#allocation7 + $0x48] sm:$0xff]  ;;  %v183_v13 = vld [vmem:[#allocation7 + $0x40] sm:$0xff]  ;;  %v182_v14 = vld [vmem:[#allocation7 + $0x38] sm:$0xff] }
  0x2a   :  { %327 = vmatpush3.msra.mxu0 %v63_v2  ;;  %338 = vmatpush3.msra.mxu1 %v189_v7  ;;  %v181_v15 = vld [vmem:[#allocation7 + $0x30] sm:$0xff]  ;;  %v180_v16 = vld [vmem:[#allocation7 + $0x28] sm:$0xff]  ;;  %v179_v17 = vld [vmem:[#allocation7 + $0x20] sm:$0xff] }
  0x2b   :  { %328 = vmatprep.subr.mxu0 %v477_v0  ;;  %339 = vmatprep.subr.mxu1 %v477_v0  ;;  %v178_v18 = vld [vmem:[#allocation7 + $0x18] sm:$0xff]  ;;  %v177_v19 = vld [vmem:[#allocation7 + $0x10] sm:$0xff]  ;;  %v176_v20 = vld [vmem:[#allocation7 + $0x8] sm:$0xff] }
  0x2c   :  { %329 = vmatpush3.msra.mxu0 %v62_v3  ;;  %340 = vmatpush3.msra.mxu1 %v188_v8  ;;  %v175_v21 = vld [vmem:[#allocation7] sm:$0xff]  ;;  %v299_v22 = vld [vmem:[%s552_s2] ss:$0 sm:$0xff] }
  0x2d   :  { %330 = vmatprep.subr.mxu0 %v477_v0  ;;  %341 = vmatprep.subr.mxu1 %v477_v0  ;;  %v301_v54 = vld [vmem:[%s554_s4] ss:$0 sm:$0xff]  ;;  %s446_s4 = scalar_lea.vmem %s290_s11, 128 }
  0x2e   :  { %331 = vmatpush3.msra.mxu0 %v61_v4  ;;  %342 = vmatpush3.msra.mxu1 %v187_v9  ;;  %p447_p1 = scmp.ne.s32.totalorder %s290_s11, %s446_s4  ;;  %p452_p3 = scmp.lt.s32.totalorder %s446_s4, %s446_s4 }
  0x2f   :  { %333 = vmatmul.mubr.msk.f32.vlgmr.msra.gmra.mxu0 %vm72_vm1, %v60_v5  ;;  %343 = vmatprep.subr.mxu1 %v477_v0 }
  0x30   :  { %344 = vmatpush3.msra.mxu1 %v186_v10  ;;  %p453_p4 = por %p452_p3, %p451_p2 }
  0x31   :  { %345 = vmatprep.subr.mxu1 %v477_v0 }
  0x32   :  { %346 = vmatpush3.msra.mxu1 %v185_v11  ;;  %p454_p5 = pnand %p453_p4, %p447_p1 }
  0x33   :  { %347 = vmatprep.subr.mxu1 %v477_v0 }
  0x34   :  { %348 = vmatpush3.msra.mxu1 %v184_v12 }
  0x35   :  { %349 = vmatprep.subr.mxu1 %v477_v0 }
  0x36   :  { %350 = vmatpush3.msra.mxu1 %v183_v13 }
  0x37   :  { %351 = vmatprep.subr.mxu1 %v477_v0 }
  0x38   :  { %352 = vmatpush3.msra.mxu1 %v182_v14 }
  0x39   :  { %353 = vmatprep.subr.mxu1 %v477_v0 }
  0x3a   :  { %354 = vmatpush3.msra.mxu1 %v181_v15 }
  0x3b   :  { %355 = vmatprep.subr.mxu1 %v477_v0 }
  0x3c   :  { %356 = vmatpush3.msra.mxu1 %v180_v16 }
  0x3d   :  { %357 = vmatprep.subr.mxu1 %v477_v0 }
  0x3e   :  { %358 = vmatpush3.msra.mxu1 %v179_v17 }
  0x3f   :  { %359 = vmatprep.subr.mxu1 %v477_v0 }
  0x40   :  { %360 = vmatpush3.msra.mxu1 %v178_v18 }
  0x41   :  { %361 = vmatprep.subr.mxu1 %v477_v0 }
  0x42   :  { %362 = vmatpush3.msra.mxu1 %v177_v19 }
  0x43   :  { %363 = vmatprep.subr.mxu1 %v477_v0 }
  0x44   :  { %364 = vmatpush3.msra.mxu1 %v176_v20 }
  0x45   :  { %365 = vmatprep.subr.mxu1 %v477_v0 }
  0x46   :  { %366 = vmatpush3.msra.mxu1 %v175_v21 }
  0xef   :  { %v142_v23 = vpop.f32.mrf.mxu0 }
  0xf0   :  { %v143_v24 = vadd.f32 %v299_v22, %v142_v23 }
  0xf1   :  { %v334_v25 = vpop.f32.mrf.mxu0 }
  0xf2   :  { %v147_v26 = vmul.f32 0.70710677, %v143_v24  ;;  %v146_v51 = vmul.f32 0.5, %v143_v24 }
  0xf4   :  { %v148_v27 = vand.u32 2147483647, %v147_v26  ;;  %vm170_vm2 = vcmp.lt.f32.partialorder %v147_v26, 0.0 }
  0xf6   :  { %v149_v28 = vmul.f32 0.3275911, %v148_v27  ;;  %v164_v30 = vsub.f32 0.0, %v148_v27 }
  0xf8   :  { %v150_v29 = vadd.f32 1.0, %v149_v28  ;;  %v165_v34 = vmul.f32 %v164_v30, %v148_v27 }
  0xfa   :  { %378 = vrcp.f32 %v150_v29  ;;  %v166_v36 = vmul.f32 1.442695, %v165_v34 }
  0xfc   :  { %380 = vpow2.f32 %v166_v36 }
 0x107   :  { %v379_v31 = vpop.eup %378 }
 0x108   :  { %v152_v32 = vmul.f32 %v379_v31, %v150_v29 }
 0x109   :  { %v381_v46 = vpop.eup %380 }
 0x10a   :  { %v153_v33 = vsub.f32 2.0, %v152_v32 }
 0x10c   :  { %v154_v35 = vmul.f32 %v379_v31, %v153_v33 }
 0x10e   :  { %v155_v37 = vmul.f32 1.0614054, %v154_v35 }
 0x110   :  { %v156_v38 = vadd.f32 -1.4531521, %v155_v37 }
 0x112   :  { %v157_v39 = vmul.f32 %v156_v38, %v154_v35 }
 0x114   :  { %v158_v40 = vadd.f32 1.4214138, %v157_v39 }
 0x116   :  { %v159_v41 = vmul.f32 %v158_v40, %v154_v35 }
 0x118   :  { %v160_v42 = vadd.f32 -0.28449672, %v159_v41 }
 0x11a   :  { %v161_v43 = vmul.f32 %v160_v42, %v154_v35 }
 0x11c   :  { %v162_v44 = vadd.f32 0.2548296, %v161_v43 }
 0x11e   :  { %v163_v45 = vmul.f32 %v162_v44, %v154_v35 }
 0x120   :  { %v168_v47 = vmul.f32 %v381_v46, %v163_v45 }
 0x122   :  { %v169_v48 = vsub.f32 1.0, %v168_v47 }
 0x124   :  { %v171_v49 = vsub.f32 0.0, %v169_v48 }
 0x126   :  { %v172_v50 = vsel %vm170_vm2, %v171_v49, %v169_v48 }
 0x127   :  { %v173_v52 = vadd.f32 1.0, %v172_v50 }
 0x129   :  { %v174_v53 = vmul.f32 %v173_v52, %v146_v51 }
 0x12b   :  { %368 = vmatmul.mubr.f32.vlgmr.msra.gmra.mxu1 %v174_v53 }
 0x1eb   :  { %v264_v55 = vpop.f32.mrf.mxu1 }
 0x1ec   :  { %v265_v56 = vadd.f32 %v301_v54, %v264_v55 }
 0x1ed   :  { %v369_v57 = vpop.f32.mrf.mxu1 }
 0x1ee   :  { %v268_v58 = vmul.f32 %v265_v56, %v265_v56 }
 0x1f0   :  { %269 = vadd.xlane.f32.xlu0 %v268_v58 }
 0x279   :  { %v270_v59 = vpop.xlane.xlu0 %269 }
 0x27a   :  { %382 = vrsqrt.f32 %v270_v59  ;;  %vm273_vm3 = vcmp.eq.f32.partialorder %v270_v59, inf  ;;  %v276_v62 = vand.u32 2147483648, %v270_v59  ;;  %vm275_vm4 = vcmp.eq.f32.partialorder %v270_v59, 0.0 }
 0x287   :  { %v383_v60 = vpop.eup %382 }
 0x288   :  { %v272_v61 = vmul.f32 %v383_v60, %v270_v59 }
 0x28a   :  { %v274_v63 = vsel %vm273_vm3, %v270_v59, %v272_v61 }
 0x28b   :  { %v277_v0 = vsel %vm275_vm4, %v276_v62, %v274_v63 }
 0x28c   :  { %v278_v1 = vmax.f32 %v277_v0, 1e-12 }
 0x28e   :  { %384 = vrcp.f32 %v278_v1 }
 0x29b   :  { %v385_v2 = vpop.eup %384 }
 0x29c   :  { %v281_v3 = vmul.f32 %v385_v2, %v265_v56 }
 0x29e   :  { %282 = vst [vmem:[#allocation8] sm:$0xff] %v281_v3 }
 0x29f   :  { %457 = shalt.err (!%p454_p5)
}
 0x2a0   :  { %292 = dma.vmem_to_hbm [thread:$0]  %s290_s11, 128, %s555_s5, [#allocation4]  }
 0x2a1   :  { %470 = dma.done.wait [#allocation4], 128  }
 0x2a2   :  { %471 = vsyncadd [#allocation4], 4294967168 }
 0x2a3   :  { %296 = vsyncpa [#allocation3], 1 }
 0x2a4   :  { %297 = vsyncpa [#allocation6], 1 }
 0x2a5   :  { %298 = vsyncpa [#allocation4], 1 }

// kernel: tpu_custom_call.1
= control target key start
LH: loop header
LB: loop body
LE: loop exit
PB: predicated region body
PF: predicated region fallthrough
CT: control target
= control target key end

     0   :  { %10 = vsyncpa [#allocation3], 0  ;;  %s550_s0 = inlined_call_operand.hbm [shape: f32[8,32], index: 0, kind: input, shape index: {}]   ;;  %s551_s1 = inlined_call_operand.hbm [shape: f32[32,128], index: 1, kind: input, shape index: {}]   ;;  %s552_s2 = inlined_call_operand.vmem [shape: f32[1,128], index: 2, kind: input, shape index: {}]   ;;  %s553_s3 = inlined_call_operand.hbm [shape: f32[128,128], index: 3, kind: input, shape index: {}]   ;;  %s554_s4 = inlined_call_operand.vmem [shape: f32[1,128], index: 4, kind: input, shape index: {}]   ;;  %s555_s5 = inlined_call_operand.hbm [shape: f32[8,128], index: 5, kind: output, shape index: {}]  }
   0x1   :  { %11 = vsyncpa [#allocation6], 0 }
   0x2   :  { %12 = vsyncpa [#allocation4], 0  ;;  %s472_s18 = smov [#allocation5]  }
   0x3   :  { %s28_s19 = sshll.u32 %s472_s18, 4  ;;  %s29_s19 = int_to_ptr.vmem [resolvable:$true] %s28_s19 }
   0x4   :  { %s394_s20 = scalar_lea.vmem %s29_s19, 512  ;;  %p399_p1 = scmp.lt.s32.totalorder %s29_s19, %s29_s19 }
   0x5   :  { %p395_p0 = scmp.ne.s32.totalorder %s29_s19, %s394_s20  ;;  %p400_p2 = scmp.lt.s32.totalorder %s394_s20, %s394_s20 }
   0x7   :  { %p401_p3 = por %p400_p2, %p399_p1 }
   0x9   :  { %p402_p4 = pnand %p401_p3, %p395_p0 }
   0xb   :  { %405 = shalt.err (!%p402_p4)
}
   0xc   :  { %s473_s21 = smov 128   ;;  %s474_s22 = smov 8  }
   0xd   :  { %34 = dma.hbm_to_vmem [thread:$0]  %s551_s1, 512, %s29_s19, [#allocation6], %s473_s21, %s473_s21, %s474_s22  }
   0xe   :  { %s475_s25 = smov [#allocation2]   ;;  %s476_s27 = smov [#allocation7]  }
   0xf   :  { %s19_s26 = sshll.u32 %s475_s25, 4  ;;  %s42_s28 = sshll.u32 %s476_s27, 4  ;;  %s20_s26 = int_to_ptr.vmem [resolvable:$true] %s19_s26  ;;  %s43_s28 = int_to_ptr.vmem [resolvable:$true] %s42_s28 }
  0x10   :  { %s414_s29 = scalar_lea.vmem %s20_s26, 128  ;;  %p419_p6 = scmp.lt.s32.totalorder %s20_s26, %s20_s26 }
  0x11   :  { %p415_p5 = scmp.ne.s32.totalorder %s20_s26, %s414_s29  ;;  %p420_p7 = scmp.lt.s32.totalorder %s414_s29, %s414_s29 }
  0x13   :  { %p421_p8 = por %p420_p7, %p419_p6 }
  0x15   :  { %p422_p9 = pnand %p421_p8, %p415_p5 }
  0x17   :  { %425 = shalt.err (!%p422_p9)
}
  0x18   :  { %22 = dma.hbm_to_vmem [thread:$0]  %s550_s0, 128, %s20_s26, [#allocation3]  }
  0x19   :  { %s434_s7 = scalar_lea.vmem %s43_s28, 2048  ;;  %p439_p11 = scmp.lt.s32.totalorder %s43_s28, %s43_s28 }
  0x1a   :  { %p435_p10 = scmp.ne.s32.totalorder %s43_s28, %s434_s7  ;;  %p440_p12 = scmp.lt.s32.totalorder %s434_s7, %s434_s7 }
  0x1c   :  { %p441_p13 = por %p440_p12, %p439_p11 }
  0x1e   :  { %p442_p0 = pnand %p441_p13, %p435_p10 }
  0x20   :  { %445 = shalt.err (!%p442_p0)
}
  0x21   :  { %48 = dma.hbm_to_vmem [thread:$0]  %s553_s3, 2048, %s43_s28, [#allocation6], %s473_s21, %s473_s21, %s474_s22  }
  0x22   :  { %466 = dma.done.wait [#allocation3], 128  }
  0x23   :  { %467 = vsyncadd [#allocation3], 4294967168 }
  0x24   :  { %468 = dma.done.wait [#allocation6], 2560  }
  0x25   :  { %469 = vsyncadd [#allocation6], 4294964736  ;;  %v477_v0 = vmov 0.0   ;;  %vm478_vm0 = vmmov 0   ;;  %v64_v1 = vld [vmem:[#allocation5 + $0x18] sm:$0xff]  ;;  %v63_v2 = vld [vmem:[#allocation5 + $0x10] sm:$0xff] }
  0x26   :  { %324 = vmatprep.subr.mxu0 %v477_v0  ;;  %332 = vmatprep.mubr.msk.f32.mxu0 %vm478_vm0, %v477_v0  ;;  %v62_v3 = vld [vmem:[#allocation5 + $0x8] sm:$0xff]  ;;  %v61_v4 = vld [vmem:[#allocation5] sm:$0xff]  ;;  %v60_v5 = vld [vmem:[#allocation2] sm:$0xff]  ;;  %vm72_vm1 = vcmask 261120   ;;  %s479_s10 = smov [#allocation8]  }
  0x27   :  { %335 = vmatprep.subr.mxu1 %v477_v0  ;;  %367 = vmatprep.mubr.msk.f32.mxu1 %vm478_vm0, %v477_v0  ;;  %v190_v6 = vld [vmem:[#allocation7 + $0x78] sm:$0xff]  ;;  %v189_v7 = vld [vmem:[#allocation7 + $0x70] sm:$0xff]  ;;  %v188_v8 = vld [vmem:[#allocation7 + $0x68] sm:$0xff]  ;;  %s289_s11 = sshll.u32 %s479_s10, 4  ;;  %s290_s11 = int_to_ptr.vmem [resolvable:$true] %s289_s11 }
  0x28   :  { %325 = vmatpush3.msra.mxu0 %v64_v1  ;;  %336 = vmatpush3.msra.mxu1 %v190_v6  ;;  %v187_v9 = vld [vmem:[#allocation7 + $0x60] sm:$0xff]  ;;  %v186_v10 = vld [vmem:[#allocation7 + $0x58] sm:$0xff]  ;;  %v185_v11 = vld [vmem:[#allocation7 + $0x50] sm:$0xff]  ;;  %p451_p2 = scmp.lt.s32.totalorder %s290_s11, %s290_s11 }
  0x29   :  { %326 = vmatprep.subr.mxu0 %v477_v0  ;;  %337 = vmatprep.subr.mxu1 %v477_v0  ;;  %v184_v12 = vld [vmem:[#allocation7 + $0x48] sm:$0xff]  ;;  %v183_v13 = vld [vmem:[#allocation7 + $0x40] sm:$0xff]  ;;  %v182_v14 = vld [vmem:[#allocation7 + $0x38] sm:$0xff] }
  0x2a   :  { %327 = vmatpush3.msra.mxu0 %v63_v2  ;;  %338 = vmatpush3.msra.mxu1 %v189_v7  ;;  %v181_v15 = vld [vmem:[#allocation7 + $0x30] sm:$0xff]  ;;  %v180_v16 = vld [vmem:[#allocation7 + $0x28] sm:$0xff]  ;;  %v179_v17 = vld [vmem:[#allocation7 + $0x20] sm:$0xff] }
  0x2b   :  { %328 = vmatprep.subr.mxu0 %v477_v0  ;;  %339 = vmatprep.subr.mxu1 %v477_v0  ;;  %v178_v18 = vld [vmem:[#allocation7 + $0x18] sm:$0xff]  ;;  %v177_v19 = vld [vmem:[#allocation7 + $0x10] sm:$0xff]  ;;  %v176_v20 = vld [vmem:[#allocation7 + $0x8] sm:$0xff] }
  0x2c   :  { %329 = vmatpush3.msra.mxu0 %v62_v3  ;;  %340 = vmatpush3.msra.mxu1 %v188_v8  ;;  %v175_v21 = vld [vmem:[#allocation7] sm:$0xff]  ;;  %v299_v22 = vld [vmem:[%s552_s2] ss:$0 sm:$0xff] }
  0x2d   :  { %330 = vmatprep.subr.mxu0 %v477_v0  ;;  %341 = vmatprep.subr.mxu1 %v477_v0  ;;  %v301_v54 = vld [vmem:[%s554_s4] ss:$0 sm:$0xff]  ;;  %s446_s4 = scalar_lea.vmem %s290_s11, 128 }
  0x2e   :  { %331 = vmatpush3.msra.mxu0 %v61_v4  ;;  %342 = vmatpush3.msra.mxu1 %v187_v9  ;;  %p447_p1 = scmp.ne.s32.totalorder %s290_s11, %s446_s4  ;;  %p452_p3 = scmp.lt.s32.totalorder %s446_s4, %s446_s4 }
  0x2f   :  { %333 = vmatmul.mubr.msk.f32.vlgmr.msra.gmra.mxu0 %vm72_vm1, %v60_v5  ;;  %343 = vmatprep.subr.mxu1 %v477_v0 }
  0x30   :  { %344 = vmatpush3.msra.mxu1 %v186_v10  ;;  %p453_p4 = por %p452_p3, %p451_p2 }
  0x31   :  { %345 = vmatprep.subr.mxu1 %v477_v0 }
  0x32   :  { %346 = vmatpush3.msra.mxu1 %v185_v11  ;;  %p454_p5 = pnand %p453_p4, %p447_p1 }
  0x33   :  { %347 = vmatprep.subr.mxu1 %v477_v0 }
  0x34   :  { %348 = vmatpush3.msra.mxu1 %v184_v12 }
  0x35   :  { %349 = vmatprep.subr.mxu1 %v477_v0 }
  0x36   :  { %350 = vmatpush3.msra.mxu1 %v183_v13 }
  0x37   :  { %351 = vmatprep.subr.mxu1 %v477_v0 }
  0x38   :  { %352 = vmatpush3.msra.mxu1 %v182_v14 }
  0x39   :  { %353 = vmatprep.subr.mxu1 %v477_v0 }
  0x3a   :  { %354 = vmatpush3.msra.mxu1 %v181_v15 }
  0x3b   :  { %355 = vmatprep.subr.mxu1 %v477_v0 }
  0x3c   :  { %356 = vmatpush3.msra.mxu1 %v180_v16 }
  0x3d   :  { %357 = vmatprep.subr.mxu1 %v477_v0 }
  0x3e   :  { %358 = vmatpush3.msra.mxu1 %v179_v17 }
  0x3f   :  { %359 = vmatprep.subr.mxu1 %v477_v0 }
  0x40   :  { %360 = vmatpush3.msra.mxu1 %v178_v18 }
  0x41   :  { %361 = vmatprep.subr.mxu1 %v477_v0 }
  0x42   :  { %362 = vmatpush3.msra.mxu1 %v177_v19 }
  0x43   :  { %363 = vmatprep.subr.mxu1 %v477_v0 }
  0x44   :  { %364 = vmatpush3.msra.mxu1 %v176_v20 }
  0x45   :  { %365 = vmatprep.subr.mxu1 %v477_v0 }
  0x46   :  { %366 = vmatpush3.msra.mxu1 %v175_v21 }
  0xef   :  { %v142_v23 = vpop.f32.mrf.mxu0 }
  0xf0   :  { %v143_v24 = vadd.f32 %v299_v22, %v142_v23 }
  0xf1   :  { %v334_v25 = vpop.f32.mrf.mxu0 }
  0xf2   :  { %v147_v26 = vmul.f32 0.70710677, %v143_v24  ;;  %v146_v51 = vmul.f32 0.5, %v143_v24 }
  0xf4   :  { %v148_v27 = vand.u32 2147483647, %v147_v26  ;;  %vm170_vm2 = vcmp.lt.f32.partialorder %v147_v26, 0.0 }
  0xf6   :  { %v149_v28 = vmul.f32 0.3275911, %v148_v27  ;;  %v164_v30 = vsub.f32 0.0, %v148_v27 }
  0xf8   :  { %v150_v29 = vadd.f32 1.0, %v149_v28  ;;  %v165_v34 = vmul.f32 %v164_v30, %v148_v27 }
  0xfa   :  { %378 = vrcp.f32 %v150_v29  ;;  %v166_v36 = vmul.f32 1.442695, %v165_v34 }
  0xfc   :  { %380 = vpow2.f32 %v166_v36 }
 0x107   :  { %v379_v31 = vpop.eup %378 }
 0x108   :  { %v152_v32 = vmul.f32 %v379_v31, %v150_v29 }
 0x109   :  { %v381_v46 = vpop.eup %380 }
 0x10a   :  { %v153_v33 = vsub.f32 2.0, %v152_v32 }
 0x10c   :  { %v154_v35 = vmul.f32 %v379_v31, %v153_v33 }
 0x10e   :  { %v155_v37 = vmul.f32 1.0614054, %v154_v35 }
 0x110   :  { %v156_v38 = vadd.f32 -1.4531521, %v155_v37 }
 0x112   :  { %v157_v39 = vmul.f32 %v156_v38, %v154_v35 }
 0x114   :  { %v158_v40 = vadd.f32 1.4214138, %v157_v39 }
 0x116   :  { %v159_v41 = vmul.f32 %v158_v40, %v154_v35 }
 0x118   :  { %v160_v42 = vadd.f32 -0.28449672, %v159_v41 }
 0x11a   :  { %v161_v43 = vmul.f32 %v160_v42, %v154_v35 }
 0x11c   :  { %v162_v44 = vadd.f32 0.2548296, %v161_v43 }
 0x11e   :  { %v163_v45 = vmul.f32 %v162_v44, %v154_v35 }
 0x120   :  { %v168_v47 = vmul.f32 %v381_v46, %v163_v45 }
 0x122   :  { %v169_v48 = vsub.f32 1.0, %v168_v47 }
 0x124   :  { %v171_v49 = vsub.f32 0.0, %v169_v48 }
 0x126   :  { %v172_v50 = vsel %vm170_vm2, %v171_v49, %v169_v48 }
 0x127   :  { %v173_v52 = vadd.f32 1.0, %v172_v50 }
 0x129   :  { %v174_v53 = vmul.f32 %v173_v52, %v146_v51 }
 0x12b   :  { %368 = vmatmul.mubr.f32.vlgmr.msra.gmra.mxu1 %v174_v53 }
 0x1eb   :  { %v264_v55 = vpop.f32.mrf.mxu1 }
 0x1ec   :  { %v265_v56 = vadd.f32 %v301_v54, %v264_v55 }
 0x1ed   :  { %v369_v57 = vpop.f32.mrf.mxu1 }
 0x1ee   :  { %v268_v58 = vmul.f32 %v265_v56, %v265_v56 }
 0x1f0   :  { %269 = vadd.xlane.f32.xlu0 %v268_v58 }
 0x279   :  { %v270_v59 = vpop.xlane.xlu0 %269 }
 0x27a   :  { %382 = vrsqrt.f32 %v270_v59  ;;  %vm273_vm3 = vcmp.eq.f32.partialorder %v270_v59, inf  ;;  %v276_v62 = vand.u32 2147483648, %v270_v59  ;;  %vm275_vm4 = vcmp.eq.f32.partialorder %v270_v59, 0.0 }
 0x287   :  { %v383_v60 = vpop.eup %382 }
 0x288   :  { %v272_v61 = vmul.f32 %v383_v60, %v270_v59 }
 0x28a   :  { %v274_v63 = vsel %vm273_vm3, %v270_v59, %v272_v61 }
 0x28b   :  { %v277_v0 = vsel %vm275_vm4, %v276_v62, %v274_v63 }
 0x28c   :  { %v278_v1 = vmax.f32 %v277_v0, 1e-12 }
 0x28e   :  { %384 = vrcp.f32 %v278_v1 }
 0x29b   :  { %v385_v2 = vpop.eup %384 }
 0x29c   :  { %v281_v3 = vmul.f32 %v385_v2, %v265_v56 }
 0x29e   :  { %282 = vst [vmem:[#allocation8] sm:$0xff] %v281_v3 }
 0x29f   :  { %457 = shalt.err (!%p454_p5)
}
 0x2a0   :  { %292 = dma.vmem_to_hbm [thread:$0]  %s290_s11, 128, %s555_s5, [#allocation4]  }
 0x2a1   :  { %470 = dma.done.wait [#allocation4], 128  }
 0x2a2   :  { %471 = vsyncadd [#allocation4], 4294967168 }
 0x2a3   :  { %296 = vsyncpa [#allocation3], 1 }
 0x2a4   :  { %297 = vsyncpa [#allocation6], 1 }
 0x2a5   :  { %298 = vsyncpa [#allocation4], 1 }

</bundles_post_ra>
